<compile_context>
chip_gen: v6e
topology: v6e:2x2x1
jax: 0.10.0
libtpu: 0.0.40
codegen_flags: <defaults>
</compile_context>

<pallas_src>
import functools

import jax
import jax.numpy as jnp
from jax.experimental import pallas as pl
from jax.experimental.pallas import tpu as pltpu


def _project_pool_kernel(x_ref, w_pg_ref, b_pg_ref, sel_ref, phi_ref, g_ref,
                         *, w_img, cip):
    """phi/g 1x1 conv + fused 2x2 max-pool for one chunk of image row-pairs."""
    xb = x_ref[...].astype(jnp.bfloat16)                               # (C, Lc)
    pg = jnp.dot(w_pg_ref[...], xb,
                 preferred_element_type=jnp.float32) + b_pg_ref[...]   # (2Cip, Lc)
    # Lane rolls (XLU) + max (VPU): every 2x2 window's max lands on the
    # window's bottom-right column; one small one-hot matmul then compacts
    # those columns into pooled row-major order (no (N, Ns) operand).
    m = jnp.maximum(pg, pltpu.roll(pg, 1, axis=1))
    m = jnp.maximum(m, pltpu.roll(m, w_img, axis=1))
    pooled = jnp.dot(m.astype(jnp.bfloat16), sel_ref[...],
                     preferred_element_type=jnp.float32)               # (2Cip, rp*Ws)
    phi_ref[...] = pooled[0:cip, :].astype(phi_ref.dtype)
    g_ref[...] = pooled[cip:2 * cip, :].astype(g_ref.dtype)


def _attention_kernel(x_ref, w_th_ref, b_th_ref, phi_ref, g_ref, w_w_ref,
                      scale_ref, shift_ref, out_ref):
    """theta + attention + W-conv + folded BN + residual for one query tile."""
    xb = x_ref[...]                                                    # (C, TQ)
    xb16 = xb.astype(jnp.bfloat16)
    # theta recomputed per tile (1/Ns already folded into its weights/bias).
    th = jnp.dot(w_th_ref[...], xb16,
                 preferred_element_type=jnp.float32) + b_th_ref[...]   # (Cip, TQ)
    # f[n, m] = sum_c theta[c, n] * phi_s[c, m]
    f = jax.lax.dot_general(th.astype(jnp.bfloat16), phi_ref[...],
                            dimension_numbers=(((0,), (0,)), ((), ())),
                            preferred_element_type=jnp.float32)        # (TQ, Ns)
    # y[n, c] = sum_m f[n, m] * g_s[c, m]
    y = jax.lax.dot_general(f.astype(jnp.bfloat16), g_ref[...],
                            dimension_numbers=(((1,), (1,)), ((), ())),
                            preferred_element_type=jnp.float32)        # (TQ, Cip)
    # W_y[c, n] = sum_c' w_W[c, c'] * y[n, c']
    wy = jax.lax.dot_general(w_w_ref[...], y.astype(jnp.bfloat16),
                             dimension_numbers=(((1,), (1,)), ((), ())),
                             preferred_element_type=jnp.float32)       # (C, TQ)
    out_ref[...] = (wy * scale_ref[...] + shift_ref[...]
                    + xb.astype(jnp.float32)).astype(out_ref.dtype)


def _vmem_limit(required_bytes):
    # Derived from actual buffer sizes; 64 MiB cap keeps it v7x-safe.
    return int(min(max(required_bytes, 32 * 1024 * 1024), 64 * 1024 * 1024))


def non_local_block_2d(x_nchw, params):
    """Forward of _NonLocalBlockND(dimension=2, sub_sample=True, bn_layer=True)."""
    B, C, H, W = x_nchw.shape
    assert H % 2 == 0 and W % 2 == 0, "MaxPool2d(2) path assumes even H and W"
    # TODO(synk): odd H/W (PyTorch floors the pooled extent) and train-mode
    # BatchNorm (batch statistics + running-stat updates) are not reproduced.
    N = H * W
    Hs, Ws = H // 2, W // 2
    Ns = Hs * Ws
    Ci = params["w_theta"].shape[0]
    Cip = ((Ci + 15) // 16) * 16            # bf16 sublane tile is (16, 128)
    f32, bf16 = jnp.float32, jnp.bfloat16
    in_dtype = x_nchw.dtype
    x_bytes = jnp.dtype(in_dtype).itemsize

    # channels-in-sublane layout; NCHW -> (B, C, N) is a free reshape.
    # x stays in its native dtype (no wrapper upcast/downcast pass).
    x = x_nchw.reshape(B, C, N)

    # ---- fold parameters ----------------------------------------------------
    def pad_rows(a, rows):
        return jnp.pad(a, ((0, rows - a.shape[0]),) + ((0, 0),) * (a.ndim - 1))

    inv_ns = 1.0 / Ns                        # the "f / f.size(-1)" normalisation
    w_th = pad_rows(params["w_theta"].astype(f32) * inv_ns, Cip).astype(bf16)
    b_th = pad_rows((params["b_theta"].astype(f32) * inv_ns).reshape(Ci, 1), Cip)

    w_pg = jnp.concatenate(
        [pad_rows(params["w_phi"].astype(f32), Cip),
         pad_rows(params["w_g"].astype(f32), Cip)], axis=0).astype(bf16)
    b_pg = jnp.concatenate(
        [pad_rows(params["b_phi"].astype(f32).reshape(Ci, 1), Cip),
         pad_rows(params["b_g"].astype(f32).reshape(Ci, 1), Cip)], axis=0)

    w_w = jnp.pad(params["w_W"].astype(f32),
                  ((0, 0), (0, Cip - Ci))).astype(bf16)                # (C, Cip)

    # Eval-mode BatchNorm + conv-W bias folded to one per-channel scale/shift.
    eps = 1e-5
    scale = params["bn_gamma"].astype(f32) * jax.lax.rsqrt(
        params["bn_var"].astype(f32) + eps)
    shift = (params["bn_beta"].astype(f32)
             + (params["b_W"].astype(f32) - params["bn_mean"].astype(f32)) * scale)
    scale_col = scale.reshape(C, 1)
    shift_col = shift.reshape(C, 1)

    # ---- kernel 1: phi/g projection + fused 2x2 max-pool --------------------
    # rp row-pairs of the image per grid step, chosen so both the x block
    # (C, rp*2W) and the pooled output block (Cip, rp*Ws) are lane-dense
    # (multiples of 128) or span the full axis.
    rp = Hs
    for cand in range(1, Hs):
        if Hs % cand:
            continue
        if ((cand * 2 * W) % 128 == 0 and (cand * Ws) % 128 == 0
                and cand * 2 * W >= 256):
            rp = cand
            break
    lc = rp * 2 * W                          # x columns per pooling step
    cols_out = rp * Ws                       # pooled columns per step
    n_pool = Hs // rp

    # One-hot compaction operand: the pooled value for local window (r, ws)
    # sits at column r*2W + 2*ws + W + 1 (bottom-right corner after the rolls).
    rr = jnp.arange(rp, dtype=jnp.int32)
    ww = jnp.arange(Ws, dtype=jnp.int32)
    tgt = (rr[:, None] * (2 * W) + 2 * ww[None, :] + W + 1).reshape(cols_out)
    sel = (jnp.arange(lc, dtype=jnp.int32)[:, None] == tgt[None, :]).astype(bf16)

    pool_blocks = (C * lc * x_bytes + 2 * Cip * C * 2 + 2 * Cip * 4
                   + lc * cols_out * 2 + 2 * (Cip * cols_out * 2))
    pool_interm = 4 * (2 * Cip) * lc * 4
    pool_flops = 2 * B * n_pool * (2 * Cip) * lc * (C + cols_out)
    pool_bytes = (B * C * N * x_bytes + 2 * Cip * C * 2 + lc * cols_out * 2
                  + 2 * B * Cip * Ns * 2)

    phi_s, g_s = pl.pallas_call(
        functools.partial(_project_pool_kernel, w_img=W, cip=Cip),
        grid=(B, n_pool),
        in_specs=[
            pl.BlockSpec((None, C, lc), lambda b, j: (b, 0, j)),
            pl.BlockSpec((2 * Cip, C), lambda b, j: (0, 0)),
            pl.BlockSpec((2 * Cip, 1), lambda b, j: (0, 0)),
            pl.BlockSpec((lc, cols_out), lambda b, j: (0, 0)),
        ],
        out_specs=(
            pl.BlockSpec((None, Cip, cols_out), lambda b, j: (b, 0, j)),
            pl.BlockSpec((None, Cip, cols_out), lambda b, j: (b, 0, j)),
        ),
        out_shape=(jax.ShapeDtypeStruct((B, Cip, Ns), bf16),
                   jax.ShapeDtypeStruct((B, Cip, Ns), bf16)),
        compiler_params=pltpu.CompilerParams(
            dimension_semantics=("parallel", "parallel"),
            vmem_limit_bytes=_vmem_limit(2 * pool_blocks + pool_interm)),
        cost_estimate=pl.CostEstimate(flops=int(pool_flops), transcendentals=0,
                                      bytes_accessed=int(pool_bytes)),
    )(x, w_pg, b_pg, sel)

    # ---- kernel 2: theta + attention + W + BN + residual --------------------
    tq = N
    for cand in (512, 384, 256, 128):
        if N % cand == 0:
            tq = cand
            break
    # TODO(synk): for large N that is not a multiple of 128 this falls back to
    # a single (C, N) query tile (the (8,128) block rule forbids other sizes).
    nq = N // tq

    attn_blocks = (C * tq * x_bytes + Cip * C * 2 + Cip * 4
                   + 2 * (Cip * Ns * 2) + C * Cip * 2 + 2 * C * 4
                   + C * tq * x_bytes)
    attn_interm = 4 * (Cip * tq + tq * Ns + tq * Cip + C * tq) + 2 * tq * Ns
    attn_flops = B * N * (2 * Cip * C + 4 * Ns * Cip + 2 * C * Cip)
    attn_bytes = (2 * B * C * N * x_bytes + 2 * B * Cip * Ns * 2
                  + Cip * C * 2 + C * Cip * 2)

    out = pl.pallas_call(
        _attention_kernel,
        grid=(B, nq),
        in_specs=[
            pl.BlockSpec((None, C, tq), lambda b, q: (b, 0, q)),
            pl.BlockSpec((Cip, C), lambda b, q: (0, 0)),
            pl.BlockSpec((Cip, 1), lambda b, q: (0, 0)),
            pl.BlockSpec((None, Cip, Ns), lambda b, q: (b, 0, 0)),
            pl.BlockSpec((None, Cip, Ns), lambda b, q: (b, 0, 0)),
            pl.BlockSpec((C, Cip), lambda b, q: (0, 0)),
            pl.BlockSpec((C, 1), lambda b, q: (0, 0)),
            pl.BlockSpec((C, 1), lambda b, q: (0, 0)),
        ],
        out_specs=pl.BlockSpec((None, C, tq), lambda b, q: (b, 0, q)),
        out_shape=jax.ShapeDtypeStruct((B, C, N), in_dtype),
        compiler_params=pltpu.CompilerParams(
            dimension_semantics=("parallel", "parallel"),
            vmem_limit_bytes=_vmem_limit(2 * attn_blocks + attn_interm)),
        cost_estimate=pl.CostEstimate(flops=int(attn_flops), transcendentals=0,
                                      bytes_accessed=int(attn_bytes)),
    )(x, w_th, b_th, phi_s, g_s, w_w, scale_col, shift_col)

    return out.reshape(B, C, H, W)


def reference(x_nchw, params):
    """Pure-JAX f32 reference mirroring the PyTorch forward (eval-mode BN)."""
    B, C, H, W = x_nchw.shape
    N = H * W
    Hs, Ws = H // 2, W // 2
    x = x_nchw.reshape(B, C, N).astype(jnp.float32)

    def conv1x1(w, b):
        return jnp.einsum("oc,bcn->bon", w, x) + b[None, :, None]

    theta = conv1x1(params["w_theta"], params["b_theta"])
    phi = conv1x1(params["w_phi"], params["b_phi"])
    g = conv1x1(params["w_g"], params["b_g"])

    def pool(t):
        t = t.reshape(B, t.shape[1], Hs, 2, Ws, 2)
        return t.max(axis=(3, 5)).reshape(B, t.shape[1], Hs * Ws)

    phi_s, g_s = pool(phi), pool(g)
    f = jnp.einsum("bcn,bcm->bnm", theta, phi_s) / phi_s.shape[-1]
    y = jnp.einsum("bnm,bcm->bcn", f, g_s)
    wy = jnp.einsum("oc,bcn->bon", params["w_W"], y) + params["b_W"][None, :, None]
    eps = 1e-5
    scale = params["bn_gamma"] * jax.lax.rsqrt(params["bn_var"] + eps)
    shift = params["bn_beta"] - params["bn_mean"] * scale
    out = wy * scale[None, :, None] + shift[None, :, None] + x
    return out.reshape(B, C, H, W)


if __name__ == "__main__":
    B, C, H, W = 2, 8, 16, 16
    Ci = max(C // 2, 1)

    key = jax.random.PRNGKey(0)
    ks = jax.random.split(key, 12)
    x = jax.random.normal(ks[0], (B, C, H, W), dtype=jnp.float32)

    # 1x1-conv weights kept in PyTorch (out_channels, in_channels) orientation;
    # biases / BN params as plain (channels,) vectors.
    params = {
        "w_theta": 0.1 * jax.random.normal(ks[1], (Ci, C), jnp.float32),
        "b_theta": 0.1 * jax.random.normal(ks[2], (Ci,), jnp.float32),
        "w_phi":   0.1 * jax.random.normal(ks[3], (Ci, C), jnp.float32),
        "b_phi":   0.1 * jax.random.normal(ks[4], (Ci,), jnp.float32),
        "w_g":     0.1 * jax.random.normal(ks[5], (Ci, C), jnp.float32),
        "b_g":     0.1 * jax.random.normal(ks[6], (Ci,), jnp.float32),
        "w_W":     0.1 * jax.random.normal(ks[7], (C, Ci), jnp.float32),
        "b_W":     0.1 * jax.random.normal(ks[8], (C,), jnp.float32),
        # NOTE: the PyTorch __init__ zero-inits the BN affine (block == identity
        # at init).  Nonzero values are used so the attention path is actually
        # exercised and numerically checked.
        "bn_gamma": 1.0 + 0.1 * jax.random.normal(ks[9], (C,), jnp.float32),
        "bn_beta":  0.1 * jax.random.normal(ks[10], (C,), jnp.float32),
        "bn_mean":  0.1 * jax.random.normal(ks[11], (C,), jnp.float32),
        "bn_var":   jnp.ones((C,), jnp.float32),
    }

    out = jax.block_until_ready(non_local_block_2d(x, params))
    ref = reference(x, params)

    assert out.shape == x.shape and out.dtype == x.dtype
    max_err = float(jnp.max(jnp.abs(out - ref)))
    # bf16 MXU operands (f32 accumulation) vs. an all-f32 reference.
    assert max_err < 2e-2, max_err
    print("KERNEL_OK")
</pallas_src>

<mosaic_0001>
module attributes {stable_mosaic.version = 11 : i64} {
  func.func @_project_pool_kernel(%arg0: i32, %arg1: i32, %arg2: memref<1x8x256xf32, #tpu.memory_space<vmem>>, %arg3: memref<32x8xbf16, #tpu.memory_space<vmem>>, %arg4: memref<32x1xf32, #tpu.memory_space<vmem>>, %arg5: memref<256x64xbf16, #tpu.memory_space<vmem>>, %arg6: memref<1x16x64xbf16, #tpu.memory_space<vmem>>, %arg7: memref<1x16x64xbf16, #tpu.memory_space<vmem>>) attributes {dimension_semantics = [#tpu.dimension_semantics<parallel>, #tpu.dimension_semantics<parallel>], iteration_bounds = array<i64: 2, 1>, scalar_prefetch = 0 : i64, scratch_operands = 0 : i64, tpu.core_type = #tpu.core_type<tc>, window_params = [{transform_indices = @transform_0, window_bounds = array<i64: 1, 8, 256>}, {pipeline_mode = #tpu.pipeline_mode<synchronous>, transform_indices = @transform_1, window_bounds = array<i64: 32, 8>}, {pipeline_mode = #tpu.pipeline_mode<synchronous>, transform_indices = @transform_2, window_bounds = array<i64: 32, 1>}, {pipeline_mode = #tpu.pipeline_mode<synchronous>, transform_indices = @transform_3, window_bounds = array<i64: 256, 64>}, {transform_indices = @transform_4, window_bounds = array<i64: 1, 16, 64>}, {transform_indices = @transform_5, window_bounds = array<i64: 1, 16, 64>}]} {
    %c0 = arith.constant 0 : index
    %c0_0 = arith.constant 0 : index
    %c0_1 = arith.constant 0 : index
    %0 = vector.load %arg2[%c0, %c0_0, %c0_1] : memref<1x8x256xf32, #tpu.memory_space<vmem>>, vector<1x8x256xf32>
    %1 = vector.shape_cast %0 : vector<1x8x256xf32> to vector<8x256xf32>
    %2 = arith.truncf %1 : vector<8x256xf32> to vector<8x256xbf16>
    %c0_2 = arith.constant 0 : index
    %c0_3 = arith.constant 0 : index
    %3 = vector.load %arg3[%c0_2, %c0_3] : memref<32x8xbf16, #tpu.memory_space<vmem>>, vector<32x8xbf16>
    %cst = arith.constant dense<0.000000e+00> : vector<32x256xf32>
    %4 = tpu.matmul %3, %2, %cst {dimension_numbers = #tpu.dot_dimension_numbers<[1], [0], [0], [1], [0, 0, 1, 1], [], []>} : vector<32x8xbf16>, vector<8x256xbf16>, vector<32x256xf32> -> vector<32x256xf32>
    %c0_4 = arith.constant 0 : index
    %c0_5 = arith.constant 0 : index
    %5 = vector.load %arg4[%c0_4, %c0_5] : memref<32x1xf32, #tpu.memory_space<vmem>>, vector<32x1xf32>
    %6 = vector.broadcast %5 : vector<32x1xf32> to vector<32x256xf32>
    %7 = arith.addf %4, %6 : vector<32x256xf32>
    %c1_i32 = arith.constant 1 : i32
    %8 = tpu.dynamic_rotate %7 by %c1_i32 dim 1 : vector<32x256xf32>, i32 -> vector<32x256xf32>
    %9 = arith.maximumf %7, %8 : vector<32x256xf32>
    %c16_i32 = arith.constant 16 : i32
    %10 = tpu.dynamic_rotate %9 by %c16_i32 dim 1 : vector<32x256xf32>, i32 -> vector<32x256xf32>
    %11 = arith.maximumf %9, %10 : vector<32x256xf32>
    %12 = arith.truncf %11 : vector<32x256xf32> to vector<32x256xbf16>
    %c0_6 = arith.constant 0 : index
    %c0_7 = arith.constant 0 : index
    %13 = vector.load %arg5[%c0_6, %c0_7] : memref<256x64xbf16, #tpu.memory_space<vmem>>, vector<256x64xbf16>
    %cst_8 = arith.constant dense<0.000000e+00> : vector<32x64xf32>
    %14 = tpu.matmul %12, %13, %cst_8 {dimension_numbers = #tpu.dot_dimension_numbers<[1], [0], [0], [1], [0, 0, 1, 1], [], []>} : vector<32x256xbf16>, vector<256x64xbf16>, vector<32x64xf32> -> vector<32x64xf32>
    %15 = vector.extract_strided_slice %14 {offsets = [0, 0], sizes = [16, 64], strides = [1, 1]} : vector<32x64xf32> to vector<16x64xf32>
    %16 = arith.truncf %15 : vector<16x64xf32> to vector<16x64xbf16>
    %c0_9 = arith.constant 0 : index
    %c0_10 = arith.constant 0 : index
    %c0_11 = arith.constant 0 : index
    %17 = vector.load %arg6[%c0_9, %c0_10, %c0_11] : memref<1x16x64xbf16, #tpu.memory_space<vmem>>, vector<1x16x64xbf16>
    %18 = vector.shape_cast %17 : vector<1x16x64xbf16> to vector<16x64xbf16>
    %19 = vector.shape_cast %16 : vector<16x64xbf16> to vector<1x16x64xbf16>
    tpu.vector_store %arg6[%c0_9, %c0_10, %c0_11], %19 {strides = array<i32>} : memref<1x16x64xbf16, #tpu.memory_space<vmem>>, vector<1x16x64xbf16>,
    %20 = vector.extract_strided_slice %14 {offsets = [16, 0], sizes = [16, 64], strides = [1, 1]} : vector<32x64xf32> to vector<16x64xf32>
    %21 = arith.truncf %20 : vector<16x64xf32> to vector<16x64xbf16>
    %c0_12 = arith.constant 0 : index
    %c0_13 = arith.constant 0 : index
    %c0_14 = arith.constant 0 : index
    %22 = vector.load %arg7[%c0_12, %c0_13, %c0_14] : memref<1x16x64xbf16, #tpu.memory_space<vmem>>, vector<1x16x64xbf16>
    %23 = vector.shape_cast %22 : vector<1x16x64xbf16> to vector<16x64xbf16>
    %24 = vector.shape_cast %21 : vector<16x64xbf16> to vector<1x16x64xbf16>
    tpu.vector_store %arg7[%c0_12, %c0_13, %c0_14], %24 {strides = array<i32>} : memref<1x16x64xbf16, #tpu.memory_space<vmem>>, vector<1x16x64xbf16>,
    return
  }
  func.func @transform_0(%arg0: i32, %arg1: i32) -> (i32, i32, i32) {
    %c0_i32 = arith.constant 0 : i32
    %c0_i32_0 = arith.constant 0 : i32
    return %arg0, %c0_i32, %arg1 : i32, i32, i32
  }
  func.func @transform_1(%arg0: i32, %arg1: i32) -> (i32, i32) {
    %c0_i32 = arith.constant 0 : i32
    %c0_i32_0 = arith.constant 0 : i32
    %c0_i32_1 = arith.constant 0 : i32
    return %c0_i32, %c0_i32_0 : i32, i32
  }
  func.func @transform_2(%arg0: i32, %arg1: i32) -> (i32, i32) {
    %c0_i32 = arith.constant 0 : i32
    %c0_i32_0 = arith.constant 0 : i32
    %c0_i32_1 = arith.constant 0 : i32
    return %c0_i32, %c0_i32_0 : i32, i32
  }
  func.func @transform_3(%arg0: i32, %arg1: i32) -> (i32, i32) {
    %c0_i32 = arith.constant 0 : i32
    %c0_i32_0 = arith.constant 0 : i32
    %c0_i32_1 = arith.constant 0 : i32
    return %c0_i32, %c0_i32_0 : i32, i32
  }
  func.func @transform_4(%arg0: i32, %arg1: i32) -> (i32, i32, i32) {
    %c0_i32 = arith.constant 0 : i32
    %c0_i32_0 = arith.constant 0 : i32
    return %arg0, %c0_i32, %arg1 : i32, i32, i32
  }
  func.func @transform_5(%arg0: i32, %arg1: i32) -> (i32, i32, i32) {
    %c0_i32 = arith.constant 0 : i32
    %c0_i32_0 = arith.constant 0 : i32
    return %arg0, %c0_i32, %arg1 : i32, i32, i32
  }
}

</mosaic_0001>

<bundles_post_ra>
// kernel: tpu_custom_call.1
= control target key start
LH: loop header
LB: loop body
LE: loop exit
PB: predicated region body
PF: predicated region fallthrough
CT: control target
= control target key end

     0   :  { %11 = vsyncpa [#allocation3], 0  ;;  %s1455_s0 = inlined_call_operand.vmem [shape: f32[2,8,256], index: 0, kind: input, shape index: {}]   ;;  %s1456_s1 = inlined_call_operand.vmem [shape: bf16[32,8], index: 1, kind: input, shape index: {}]   ;;  %s1457_s2 = inlined_call_operand.vmem [shape: f32[32,1], index: 2, kind: input, shape index: {}]   ;;  %s1458_s3 = inlined_call_operand.vmem [shape: bf16[256,64], index: 3, kind: input, shape index: {}]   ;;  %s1459_s4 = inlined_call_operand.hbm [shape: bf16[2,16,64], index: 4, kind: output, shape index: {0}]   ;;  %s1460_s5 = inlined_call_operand.hbm [shape: bf16[2,16,64], index: 5, kind: output, shape index: {1}]  }
   0x1   :  { %13 = vsyncpa [#allocation3 + $0x1], 0 }
   0x2   :  { %14 = vsyncpa [#allocation5], 0 }
   0x3   :  { %16 = vsyncpa [#allocation5 + $0x1], 0  ;;  %s1158_s18 = smov 0   ;;  %s1160_s19 = smov 0  }
   0x4   :  { %s1162_s20 = smov 0   ;;  %s1164_s21 = smov 0  }
   0x5   :  { %s1166_s22 = smov 0   ;;  %s1168_s23 = smov 0  }
   0x6 LB: > { %s795_s24 = sadd.s32 4294967295, %s1119_s23   ;;  %s796_s25 = sadd.s32 4294967294, %s1119_s23   ;;  %s1119_s23 = sphi %s1168_s23, %s22_s23   ;;  %s1115_s22 = sphi %s1166_s22, %s1467_s22   ;;  %s1111_s21 = sphi %s1164_s21, %s1466_s21   ;;  %s1107_s20 = sphi %s1162_s20, %s1465_s20   ;;  %s1103_s19 = sphi %s1160_s19, %s1464_s19   ;;  %s1099_s18 = sphi %s1158_s18, %s1463_s18  }
   0x7   : > { %s34_s26 = sadd.s32 1, %s1115_s22  ;;  %s134_s27 = sadd.s32 1, %s1107_s20 }
   0x8   : > { %p36_p0 = scmp.ge.s32.totalorder %s34_s26, 2  ;;  %p144_p1 = scmp.ne.s32.totalorder %s1107_s20, %s1103_s19 }
   0x9   : > { %p145_p2 = scmp.eq.s32.totalorder %s795_s24, 1  ;;  %p150_p3 = scmp.ne.s32.totalorder %s1103_s19, %s1099_s18 }
   0xa   : > { %s1469_s26 = smov (%p36_p0, %s34_s26), 0  ;;  %p151_p5 = scmp.eq.s32.totalorder %s796_s25, 1 }
   0xb   : > { %p1198_p4 = por %p145_p2, %p144_p1  ;;  %s129_s29 = ssub.s32 %s1115_s22, %s1469_s26 }
   0xc   : > { %p799_p6 = scmp.ge.s32.totalorder %s1119_s23, 1  ;;  %p132_p7 = scmp.eq.s32.totalorder %s129_s29, 0 }
   0xd   : > { %p1205_p8 = por %p151_p5, %p150_p3  ;;  %p219_p9 = scmp.lt.s32.totalorder %s1119_s23, 3 }
   0xe   : > { %s1211_s6 = scalar_select %p132_p7, %s1107_s20, %s134_s27  }
   0xf   : > { %p220_p10 = pnand %p799_p6, %p219_p9 }
  0x10   : > { %p257_p11 = scmp.lt.s32.totalorder (!%p220_p10), %s1111_s21, 1  ;;  %s1122_s9 = smov (!%p220_p10), 1  }
  0x11   : > { %223 = sbr.rel (%p220_p10) target bundleno = 728 (0x2d8), region = 36  ;;  %s1123_s12 = smov (!%p220_p10), 16  }
  0x12   : > { %s1353_s13 = sand.u32 (!%p220_p10), 1, %s1103_s19   ;;  %s842_s17 = sshll.u32 (!%p220_p10), %s1111_s21, 7 }
  0x13   : > { %s1367_s27 = scalar_lea.hbm (!%p220_p10), %s1459_s4, %s842_s17  ;;  %s647_s29 = scalar_lea.sflag (!%p220_p10), [#allocation3], %s1353_s13 }
  0x14   : > { %s1124_s8 = smov (!%p220_p10), [#allocation2]  }
  0x16   : > { %v1121_v0 = vmov 0   ;;  %s258_s7 = scalar_select %p257_p11, %s1111_s21, 1  ;;  %v275_v1 = vld [vmem:[%s1457_s2] sm:$0xff]  ;;  %v277_v2 = vld [vmem:[%s1457_s2 + $0x10] sm:$0xff]  ;;  %v276_v3 = vld [vmem:[%s1457_s2 + $0x8] sm:$0xff]  ;;  %vm316_vm0 = vcmask 1043456   ;;  %v392_v46 = vlaneseq }
  0x17   : > { %355 = vmatprep.mubr.bf16.mxu0 %v1121_v0  ;;  %953 = vset.pattern.permute.xlu0 %v1121_v0  ;;  %v278_v4 = vld [vmem:[%s1457_s2 + $0x18] sm:$0xff]  ;;  %v995_v9 = vld [vmem:[%s1456_s1] sm:$0xff]   ;;  %vm309_vm1 = vcmask 64512   ;;  %v996_v11 = vld [vmem:[%s1456_s1 + $0x8] sm:$0xff]   ;;  %vm633_vm4 = vcmask 519168  }
  0x18   : > { %954 = vset.pattern.permute.xlu1 %v1121_v0  ;;  %281 = vperm.xlu0 %953, %v275_v1   ;;  %s837_s14 = sshll.u32 %s258_s7, 4  ;;  %v997_v36 = vld [vmem:[%s1458_s3 + $0x78] sm:$0xff]   ;;  %v999_v38 = vld [vmem:[%s1458_s3 + $0x70] sm:$0xff]   ;;  %v1001_v40 = vld [vmem:[%s1458_s3 + $0x68] sm:$0xff]   ;;  %v1296_v50 = vand.u32 127, %v392_v46 }
  0x19   : > { %291 = vperm.xlu1 %954, %v277_v2   ;;  %s264_s25 = scalar_lea.vmem %s1455_s0, %s837_s14  ;;  %v998_v37 = vld [vmem:[%s1458_s3 + $0x38] sm:$0xff]   ;;  %v1000_v39 = vld [vmem:[%s1458_s3 + $0x30] sm:$0xff]   ;;  %872 = vmatprep.subr.bf16.mxu1 %v997_v36  ;;  %v1002_v41 = vld [vmem:[%s1458_s3 + $0x28] sm:$0xff]   ;;  %s800_s14 = sshll.u32 %s1353_s13, 3 }
  0x1a   : > { %v268_v5 = vld [vmem:[%s264_s25 + $0x8] sm:$0xff]  ;;  %v267_v6 = vld [vmem:[%s264_s25] sm:$0xff]  ;;  %880 = vmatpush3.bf16.msra.mxu1 %v998_v37  ;;  %v1005_v44 = vld [vmem:[%s1458_s3 + $0x58] sm:$0xff]   ;;  %vm394_vm2 = vcmp.lt.s32.totalorder %v1296_v50, 1  ;;  %vm427_vm3 = vcmp.lt.s32.totalorder %v1296_v50, 16  ;;  %s248_s15 = scalar_lea.vmem [#allocation2], %s800_s14 }
  0x1b   : > { %v270_v7 = vpack.c.bf16 %v268_v5, %v268_v5  ;;  %v269_v8 = vpack.c.bf16 %v267_v6, %v267_v6  ;;  %873 = vmatprep.subr.bf16.mxu1 %v999_v38  ;;  %v1003_v42 = vld [vmem:[%s1458_s3 + $0x60] sm:$0xff]   ;;  %v1006_v45 = vld [vmem:[%s1458_s3 + $0x18] sm:$0xff]   ;;  %v1007_v47 = vld [vmem:[%s1458_s3 + $0x50] sm:$0xff]   ;;  %s666_s16 = sshll.u32 %s248_s15, 4  ;;  %s1360_s16 = int_to_ptr.vmem [resolvable:$true] %s666_s16 }
  0x1c   : > { %286 = vperm.xlu0 %953, %v276_v3   ;;  %v1004_v43 = vld [vmem:[%s1458_s3 + $0x20] sm:$0xff]   ;;  %v1008_v48 = vld [vmem:[%s1458_s3 + $0x10] sm:$0xff]   ;;  %v1009_v51 = vld [vmem:[%s1458_s3 + $0x48] sm:$0xff]   ;;  %s1013_s7 = scalar_lea.vmem %s1360_s16, 128 }
  0x1d   : > { %296 = vperm.xlu1 %954, %v278_v4   ;;  %806 = vmatprep.subr.msk.bf16.mxu0 %vm316_vm0, %v270_v7  ;;  %v318_v10 = vsel %vm316_vm0, %v269_v8, 0  ;;  %v1010_v52 = vld [vmem:[%s1458_s3 + $0x8] sm:$0xff]   ;;  %v1011_v58 = vld [vmem:[%s1458_s3 + $0x40] sm:$0xff]   ;;  %p1014_p12 = scmp.ne.s32.totalorder %s1360_s16, %s1013_s7 }
  0x1e   : > { %338 = vmatpush1.bf16.msra.mxu0 %v318_v10  ;;  %881 = vmatpush3.bf16.msra.mxu1 %v1000_v39  ;;  %v1012_v59 = vld [vmem:[%s1458_s3] sm:$0xff]  }
  0x1f   : > { %844 = vmatprep.subr.bf16.mxu0 %v997_v36  ;;  %874 = vmatprep.subr.bf16.mxu1 %v1001_v40  ;;  %p1015_p13 = pnand %p1014_p12, %p1198_p4 }
  0x21   : > { %807 = vmatmul.mubr.msk.bf16.vlgmr.msra.gmra.mxu0 %vm309_vm1, %v995_v9  ;;  %p1016_p0 = pneg %p1015_p13 }
  0x22   : > { %365 = vmatprep.mubr.bf16.mxu0 %v1121_v0  ;;  %845 = vmatpush3.bf16.msra.mxu0 %v998_v37 }
  0x23   : > { %846 = vmatprep.subr.bf16.mxu0 %v999_v38  ;;  %882 = vmatpush3.bf16.msra.mxu1 %v1002_v41 }
  0x24   : > { %875 = vmatprep.subr.bf16.mxu1 %v1003_v42 }
  0x26   : > { %847 = vmatpush3.bf16.msra.mxu0 %v1000_v39 }
  0x27   : > { %848 = vmatprep.subr.bf16.mxu0 %v1001_v40  ;;  %883 = vmatpush3.bf16.msra.mxu1 %v1004_v43 }
  0x28   : > { %876 = vmatprep.subr.bf16.mxu1 %v1005_v44 }
  0x29   : > { %808 = vmatmul.mubr.msk.bf16.gmra.mxu0 %vm309_vm1, %v996_v11 }
  0x2a   : > { %849 = vmatpush3.bf16.msra.mxu0 %v1002_v41 }
  0x2b   : > { %850 = vmatprep.subr.bf16.mxu0 %v1003_v42  ;;  %884 = vmatpush3.bf16.msra.mxu1 %v1006_v45 }
  0x2c   : > { %877 = vmatprep.subr.bf16.mxu1 %v1007_v47 }
  0x2e   : > { %851 = vmatpush3.bf16.msra.mxu0 %v1004_v43 }
  0x2f   : > { %852 = vmatprep.subr.bf16.mxu0 %v1005_v44  ;;  %885 = vmatpush3.bf16.msra.mxu1 %v1008_v48 }
  0x30   : > { %878 = vmatprep.subr.bf16.mxu1 %v1009_v51 }
  0x32   : > { %853 = vmatpush3.bf16.msra.mxu0 %v1006_v45 }
  0x33   : > { %854 = vmatprep.subr.bf16.mxu0 %v1007_v47  ;;  %886 = vmatpush3.bf16.msra.mxu1 %v1010_v52 }
  0x34   : > { %879 = vmatprep.subr.bf16.mxu1 %v1011_v58 }
  0x36   : > { %855 = vmatpush3.bf16.msra.mxu0 %v1008_v48 }
  0x37   : > { %856 = vmatprep.subr.bf16.mxu0 %v1009_v51  ;;  %887 = vmatpush3.bf16.msra.mxu1 %v1012_v59 }
  0x3a   : > { %857 = vmatpush3.bf16.msra.mxu0 %v1010_v52 }
  0x3b   : > { %858 = vmatprep.subr.bf16.mxu0 %v1011_v58 }
  0x3e   : > { %859 = vmatpush3.bf16.msra.mxu0 %v1012_v59 }
  0x93   : > { %v282_v12 = vpop.permute.xlu0 %281 }
  0x94   : > { %v292_v19 = vpop.permute.xlu1 %291 }
  0x97   : > { %v287_v15 = vpop.permute.xlu0 %286 }
  0x98   : > { %v297_v27 = vpop.permute.xlu1 %296 }
  0xe1   : > { %v357_v13 = vpop.f32.mrf.mxu0 }
  0xe2   : > { %v1236_v17 = vadd.f32 %v357_v13, %v282_v12 }
  0xe3   : > { %v359_v14 = vpop.f32.mrf.mxu0 }
  0xe4   : > { %v1244_v24 = vadd.f32 %v359_v14, %v282_v12 }
  0xe5   : > { %v361_v16 = vpop.f32.mrf.mxu0 }
  0xe6   : > { %v1238_v18 = vadd.f32 %v361_v16, %v287_v15 }
  0xe7   : > { %v363_v20 = vpop.f32.mrf.mxu0 }
  0xe8   : > { %v955_v21 = vpack.i.bf16 %v1238_v18, %v1236_v17  ;;  %v1242_v22 = vadd.f32 %v363_v20, %v287_v15 }
  0xe9   : > { %v367_v23 = vpop.f32.mrf.mxu0 }
  0xea   : > { %956 = vrot.lane.b32.xlu0 %v955_v21, %s1122_s9  ;;  %v960_v26 = vpack.i.bf16 %v1242_v22, %v1244_v24  ;;  %v1248_v29 = vadd.f32 %v367_v23, %v292_v19 }
  0xeb   : > { %v369_v25 = vpop.f32.mrf.mxu0 }
  0xec   : > { %v1256_v34 = vadd.f32 %v369_v25, %v292_v19 }
  0xed   : > { %v371_v28 = vpop.f32.mrf.mxu0 }
  0xee   : > { %v1250_v30 = vadd.f32 %v371_v28, %v297_v27  ;;  %961 = vrot.lane.b32.xlu0 %v960_v26, %s1122_s9 }
  0xef   : > { %v373_v31 = vpop.f32.mrf.mxu0 }
  0xf0   : > { %v965_v32 = vpack.i.bf16 %v1250_v30, %v1248_v29  ;;  %v1254_v33 = vadd.f32 %v373_v31, %v297_v27 }
  0xf2   : > { %966 = vrot.lane.b32.xlu1 %v965_v32, %s1122_s9  ;;  %v970_v35 = vpack.i.bf16 %v1254_v33, %v1256_v34 }
  0xf6   : > { %971 = vrot.lane.b32.xlu1 %v970_v35, %s1122_s9  ;;  %s1017_s9 = sshll.u32 %s1124_s8, 4  ;;  %s1018_s9 = int_to_ptr.vmem [resolvable:$false] %s1017_s9 }
  0xf7   : > { %s1019_s10 = scalar_lea.vmem %s1018_s9, 256  ;;  %p1020_p1 = scmp.lt.s32.totalorder %s1360_s16, %s1018_s9 }
  0xf8   : > { %p1021_p2 = scmp.lt.s32.totalorder %s1019_s10, %s1013_s7 }
  0xfa   : > { %p1022_p3 = por %p1021_p2, %p1020_p1 }
  0xfc   : > { %p1023_p5 = pnand %p1022_p3, %p1016_p0 }
 0x15c   : > { %v957_v49 = vpop.permute.xlu0 %956 }
 0x15d   : > { %v959_v54 = vunpack.i.h.bf16 %v957_v49  ;;  %v958_v55 = vunpack.i.l.bf16 %v957_v49 }
 0x160   : > { %v962_v53 = vpop.permute.xlu0 %961 }
 0x161   : > { %v964_v56 = vunpack.i.h.bf16 %v962_v53  ;;  %v963_v57 = vunpack.i.l.bf16 %v962_v53 }
 0x163   : > { %v395_v60 = vsel %vm394_vm2, %v958_v55, %v963_v57  ;;  %v396_v61 = vsel %vm394_vm2, %v959_v54, %v964_v56  ;;  %v399_v62 = vsel %vm394_vm2, %v963_v57, %v958_v55  ;;  %v400_v63 = vsel %vm394_vm2, %v964_v56, %v959_v54 }
 0x164   : > { %v967_v0 = vpop.permute.xlu1 %966  ;;  %v403_v1 = vmax.f32 %v1236_v17, %v399_v62  ;;  %v405_v2 = vmax.f32 %v1238_v18, %v400_v63  ;;  %v404_v4 = vmax.f32 %v1244_v24, %v395_v60  ;;  %v406_v5 = vmax.f32 %v1242_v22, %v396_v61 }
 0x165   : > { %v969_v7 = vunpack.i.h.bf16 %v967_v0  ;;  %v968_v8 = vunpack.i.l.bf16 %v967_v0 }
 0x166   : > { %v975_v3 = vpack.i.bf16 %v405_v2, %v403_v1  ;;  %v985_v11 = vpack.i.bf16 %v406_v5, %v404_v4 }
 0x168   : > { %v972_v6 = vpop.permute.xlu1 %971  ;;  %976 = vrot.lane.b32.xlu0 %v975_v3, %s1123_s12 }
 0x169   : > { %v974_v9 = vunpack.i.h.bf16 %v972_v6  ;;  %v973_v10 = vunpack.i.l.bf16 %v972_v6 }
 0x16b   : > { %v397_v12 = vsel %vm394_vm2, %v968_v8, %v973_v10  ;;  %v398_v13 = vsel %vm394_vm2, %v969_v7, %v974_v9  ;;  %v401_v14 = vsel %vm394_vm2, %v973_v10, %v968_v8  ;;  %v402_v15 = vsel %vm394_vm2, %v974_v9, %v969_v7 }
 0x16c   : > { %986 = vrot.lane.b32.xlu0 %v985_v11, %s1123_s12  ;;  %v407_v16 = vmax.f32 %v1248_v29, %v401_v14  ;;  %v409_v17 = vmax.f32 %v1250_v30, %v402_v15  ;;  %v408_v19 = vmax.f32 %v1256_v34, %v397_v12  ;;  %v410_v20 = vmax.f32 %v1254_v33, %v398_v13 }
 0x16e   : > { %v980_v18 = vpack.i.bf16 %v409_v17, %v407_v16  ;;  %v990_v21 = vpack.i.bf16 %v410_v20, %v408_v19 }
 0x170   : > { %981 = vrot.lane.b32.xlu1 %v980_v18, %s1123_s12 }
 0x174   : > { %991 = vrot.lane.b32.xlu1 %v990_v21, %s1123_s12 }
 0x1da   : > { %v977_v22 = vpop.permute.xlu0 %976 }
 0x1db   : > { %v979_v24 = vunpack.i.h.bf16 %v977_v22  ;;  %v978_v25 = vunpack.i.l.bf16 %v977_v22 }
 0x1de   : > { %v987_v23 = vpop.permute.xlu0 %986 }
 0x1df   : > { %v989_v26 = vunpack.i.h.bf16 %v987_v23  ;;  %v988_v27 = vunpack.i.l.bf16 %v987_v23 }
 0x1e1   : > { %v429_v28 = vsel %vm427_vm3, %v979_v24, %v989_v26  ;;  %v433_v29 = vsel %vm427_vm3, %v989_v26, %v979_v24  ;;  %v428_v30 = vsel %vm427_vm3, %v978_v25, %v988_v27  ;;  %v432_v31 = vsel %vm427_vm3, %v988_v27, %v978_v25 }
 0x1e2   : > { %v438_v32 = vmax.f32 %v405_v2, %v433_v29  ;;  %v436_v33 = vmax.f32 %v403_v1, %v432_v31  ;;  %v982_v34 = vpop.permute.xlu1 %981  ;;  %v437_v35 = vmax.f32 %v404_v4, %v428_v30  ;;  %v439_v36 = vmax.f32 %v406_v5, %v429_v28 }
 0x1e3   : > { %v984_v40 = vunpack.i.h.bf16 %v982_v34  ;;  %v983_v41 = vunpack.i.l.bf16 %v982_v34 }
 0x1e4   : > { %v444_v37 = vpack.c.bf16 %v438_v32, %v436_v33  ;;  %v445_v38 = vpack.c.bf16 %v439_v36, %v437_v35 }
 0x1e6   : > { %v992_v39 = vpop.permute.xlu1 %991  ;;  %608 = vmatprep.mubr.bf16.mxu0 %v445_v38 }
 0x1e7   : > { %v994_v42 = vunpack.i.h.bf16 %v992_v39  ;;  %v993_v43 = vunpack.i.l.bf16 %v992_v39  ;;  %609 = vmatmul.mubr.bf16.vlgmr.msra.gmra.mxu0 %v444_v37 }
 0x1e9   : > { %v435_v44 = vsel %vm427_vm3, %v994_v42, %v984_v40  ;;  %v434_v45 = vsel %vm427_vm3, %v993_v43, %v983_v41  ;;  %v430_v46 = vsel %vm427_vm3, %v983_v41, %v993_v43  ;;  %v431_v47 = vsel %vm427_vm3, %v984_v40, %v994_v42 }
 0x1ea   : > { %v441_v48 = vmax.f32 %v408_v19, %v430_v46  ;;  %v443_v49 = vmax.f32 %v410_v20, %v431_v47  ;;  %v440_v51 = vmax.f32 %v407_v16, %v434_v45  ;;  %v442_v52 = vmax.f32 %v409_v17, %v435_v44 }
 0x1ec   : > { %v447_v53 = vpack.c.bf16 %v443_v49, %v441_v48  ;;  %v446_v54 = vpack.c.bf16 %v442_v52, %v440_v51 }
 0x1ee   : > { %616 = vmatprep.mubr.bf16.mxu1 %v447_v53 }
 0x1ef   : > { %617 = vmatmul.mubr.bf16.vlgmr.msra.gmra.mxu1 %v446_v54 }
 0x2a7   : > { %v860_v55 = vpop.f32.mrf.mxu0 }
 0x2a9   : > { %v861_v56 = vpop.f32.mrf.mxu0 }
 0x2aa   : > { %v862_v57 = vadd.f32 %v861_v56, %v860_v55 }
 0x2ab   : > { %v863_v50 = vpop.f32.mrf.mxu0 }
 0x2ac   : > { %v838_v58 = vpack.c.bf16 %v862_v57, %v862_v57 }
 0x2ad   : > { %v864_v59 = vpop.f32.mrf.mxu0 }
 0x2ae   : > { %634 = vst.msk [vmem:[%s248_s15] sm:$0xf] %vm633_vm4, %v838_v58  ;;  %v865_v60 = vadd.f32 %v864_v59, %v863_v50 }
 0x2af   : > { %v866_v61 = vpop.f32.mrf.mxu1 }
 0x2b0   : > { %v839_v62 = vpack.c.bf16 %v865_v60, %v865_v60 }
 0x2b1   : > { %v867_v63 = vpop.f32.mrf.mxu1 }
 0x2b2   : > { %635 = vst.msk [vmem:[%s248_s15 + $0x4] sm:$0xf] %vm633_vm4, %v839_v62  ;;  %v868_v0 = vadd.f32 %v867_v63, %v866_v61 }
 0x2b3   : > { %v869_v1 = vpop.f32.mrf.mxu1 }
 0x2b4   : > { %1026 = shalt.err (!%p1023_p5)
}
 0x2b5   : > { %s1027_s11 = scalar_lea.hbm %s1367_s27, 128  ;;  %s1031_s24 = scalar_lea.hbm %s1459_s4, 256 }
 0x2b6   : > { %p1028_p6 = scmp.ne.s32.totalorder %s1367_s27, %s1027_s11  ;;  %p1032_p10 = scmp.lt.s32.totalorder %s1367_s27, %s1459_s4 }
 0x2b7   : > { %p1033_p11 = scmp.lt.s32.totalorder %s1031_s24, %s1027_s11 }
 0x2b8   : > { %p1029_p7 = pnand %p1028_p6, %p1198_p4 }
 0x2b9   : > { %p1034_p12 = por %p1033_p11, %p1032_p10 }
 0x2ba   : > { %p1030_p9 = pneg %p1029_p7 }
 0x2bc   : > { %p1035_p13 = pnand %p1034_p12, %p1030_p9 }
 0x2be   : > { %1038 = shalt.err (!%p1035_p13)
}
 0x2bf   : > { %s1125_s7 = smov 64   ;;  %s1126_s9 = smov 4   ;;  %v840_v2 = vpack.c.bf16 %v868_v0, %v868_v0  ;;  %v870_v3 = vpop.f32.mrf.mxu1 }
 0x2c0   : > { %888 = dma.vmem_to_hbm [thread:$0]  (%p1198_p4), %s1360_s16, 128, %s1367_s27, %s647_s29, %s1125_s7, %s1125_s7, %s1126_s9   ;;  %v871_v4 = vadd.f32 %v870_v3, %v869_v1 }
 0x2c1   : > { %s255_s10 = scalar_lea.vmem [#allocation4], %s800_s14  ;;  %s1406_s24 = scalar_lea.hbm %s1460_s5, %s842_s17 }
 0x2c2   : > { %s683_s11 = sshll.u32 %s255_s10, 4  ;;  %644 = vst.msk [vmem:[%s255_s10] sm:$0xf] %vm633_vm4, %v840_v2  ;;  %v841_v5 = vpack.c.bf16 %v871_v4, %v871_v4  ;;  %s652_s14 = scalar_lea.sflag [#allocation5], %s1353_s13  ;;  %s1399_s11 = int_to_ptr.vmem [resolvable:$true] %s683_s11 }
 0x2c3   : > { %s1039_s16 = scalar_lea.vmem %s1399_s11, 128  ;;  %s1127_s27 = smov [#allocation4]  }
 0x2c4   : > { %645 = vst.msk [vmem:[%s255_s10 + $0x4] sm:$0xf] %vm633_vm4, %v841_v5  ;;  %p1040_p0 = scmp.ne.s32.totalorder %s1399_s11, %s1039_s16  ;;  %s1043_s29 = sshll.u32 %s1127_s27, 4  ;;  %s1044_s29 = int_to_ptr.vmem [resolvable:$false] %s1043_s29 }
 0x2c5   : > { %s1045_s25 = scalar_lea.vmem %s1044_s29, 256  ;;  %p1046_p3 = scmp.lt.s32.totalorder %s1399_s11, %s1044_s29 }
 0x2c6   : > { %p1041_p1 = pnand %p1040_p0, %p1198_p4  ;;  %p1047_p5 = scmp.lt.s32.totalorder %s1045_s25, %s1039_s16 }
 0x2c8   : > { %p1042_p2 = pneg %p1041_p1  ;;  %p1048_p6 = por %p1047_p5, %p1046_p3 }
 0x2ca   : > { %p1049_p7 = pnand %p1048_p6, %p1042_p2 }
 0x2cc   : > { %1052 = shalt.err (!%p1049_p7)
}
 0x2cd   : > { %s1053_s21 = scalar_lea.hbm %s1406_s24, 128  ;;  %s1057_s8 = scalar_lea.hbm %s1460_s5, 256 }
 0x2ce   : > { %p1054_p9 = scmp.ne.s32.totalorder %s1406_s24, %s1053_s21  ;;  %p1058_p12 = scmp.lt.s32.totalorder %s1406_s24, %s1460_s5 }
 0x2cf   : > { %p1059_p13 = scmp.lt.s32.totalorder %s1057_s8, %s1053_s21 }
 0x2d0   : > { %p1055_p10 = pnand %p1054_p9, %p1198_p4 }
 0x2d1   : > { %p1060_p0 = por %p1059_p13, %p1058_p12 }
 0x2d2   : > { %p1056_p11 = pneg %p1055_p10 }
 0x2d4   : > { %p1061_p1 = pnand %p1060_p0, %p1056_p11 }
 0x2d6   : > { %1064 = shalt.err (!%p1061_p1)
}
 0x2d7   : > { %889 = dma.vmem_to_hbm [thread:$0]  (%p1198_p4), %s1399_s11, 128, %s1406_s24, %s652_s14, %s1125_s7, %s1125_s7, %s1126_s9  }
 0x2d8 PF: > { %p899_p2 = scmp.ge.s32.totalorder %s1119_s23, 2  ;;  %s698_s15 = sand.u32 1, %s1099_s18  }
 0x2d9   : > { %s699_s16 = scalar_lea.sflag [#allocation3], %s698_s15 }
 0x2da   : > { %p893_p3 = pnand %p899_p2, %p1205_p8 }
 0x2dc   : > { %p894_p5 = pneg %p893_p3 }
 0x2de   : > { %1090 = dma.done.wait (%p894_p5), %s699_s16, 128  }
 0x2df   : > { %1092 = vsyncadd (%p894_p5), %s699_s16, 4294967168  ;;  %s708_s27 = scalar_lea.sflag [#allocation5], %s698_s15 }
 0x2e0   : > { %1094 = dma.done.wait (%p894_p5), %s708_s27, 128  }
 0x2e1   : > { %1096 = vsyncadd (%p894_p5), %s708_s27, 4294967168  ;;  %s22_s23 = sadd.s32 1, %s1119_s23   ;;  %s1463_s18 = smov %s1103_s19 }
 0x2e2   : > { %p19_p6 = scmp.ge.s32.totalorder %s22_s23, 4   ;;  %s1464_s19 = smov %s1107_s20 }
 0x2e3   : > { %s1465_s20 = smov %s1211_s6  ;;  %s1466_s21 = smov %s1115_s22 }
 0x2e4   : > { %s1467_s22 = smov %s1469_s26  ;;  %21 = sbr.rel (!%p19_p6) target bundleno = 6 (0x6), region = 88 }
 0x2e9   :  { %713 = vsyncpa [#allocation3], 1 }
 0x2ea   :  { %715 = vsyncpa [#allocation3 + $0x1], 1 }
 0x2eb   :  { %716 = vsyncpa [#allocation5], 1 }
 0x2ec   :  { %718 = vsyncpa [#allocation5 + $0x1], 1 }

</bundles_post_ra>
